<compile_context>
chip_gen: v7x
topology: tpu7x:2x2x1
jax: 0.10.0
libtpu: 0.0.40
codegen_flags: <defaults>
</compile_context>

<pallas_src>
import functools
import math

import numpy as np
import jax
import jax.numpy as jnp
from jax import lax
from jax.experimental import pallas as pl
from jax.experimental.pallas import tpu as pltpu


# --------------------------------- kernels ----------------------------------


def _mu_kernel(x_ref, w_ref, b_ref, o_ref, acc_ref, *, precision):
    # sample=False: y = x @ mu.T + b, with mu already stored as (K, N).
    k = pl.program_id(2)

    @pl.when(k == 0)
    def _():
        acc_ref[...] = jnp.zeros_like(acc_ref)

    acc_ref[...] += jnp.dot(x_ref[...], w_ref[...],
                            preferred_element_type=jnp.float32,
                            precision=precision)

    @pl.when(k == pl.num_programs(2) - 1)
    def _():
        o_ref[...] = (acc_ref[...] + b_ref[...]).astype(o_ref.dtype)


def _sample_kernel(x_ref, w_ref, sig_ref, eps_ref, b_ref, o_ref, acc_ref, *,
                   precision):
    # sample=True: W = mu + sigma * eps fused per K-tile (never materialized
    # at full size).  Sampling arithmetic stays f32 on the VPU (the casts are
    # no-ops when the HBM stream is already f32); only the dot operand is cast
    # back to the streamed compute dtype for the MXU.
    k = pl.program_id(2)

    @pl.when(k == 0)
    def _():
        acc_ref[...] = jnp.zeros_like(acc_ref)

    w = (w_ref[...].astype(jnp.float32)
         + sig_ref[...].astype(jnp.float32) * eps_ref[...].astype(jnp.float32))
    acc_ref[...] += jnp.dot(x_ref[...], w.astype(x_ref.dtype),
                            preferred_element_type=jnp.float32,
                            precision=precision)

    @pl.when(k == pl.num_programs(2) - 1)
    def _():
        o_ref[...] = (acc_ref[...] + b_ref[...]).astype(o_ref.dtype)


# --------------------------------- helpers -----------------------------------


def _round_up(x, m):
    return ((x + m - 1) // m) * m


def _pad2d(a, rows, cols):
    r, c = a.shape
    if r == rows and c == cols:
        return a
    return jnp.pad(a, ((0, rows - r), (0, cols - c)))


def _softplus(x):
    # Numerically stable log1p(exp(x)).
    return jnp.maximum(x, 0.0) + jnp.log1p(jnp.exp(-jnp.abs(x)))


# --------------------- one-time parameter preparation ------------------------


def prepare_bayesian_linear_params(weight_mu, weight_rho, bias, *,
                                   compute_dtype=jnp.bfloat16,
                                   tn=256, tk=512):
    """One-time prep (amortized across forwards): transpose weight_mu to the
    MXU-native (K, N) layout, pad to lane multiples, cast to the HBM streaming
    dtype, and fold softplus(rho) into a (1, Np) sigma row (zero in padding)."""
    N, K = weight_mu.shape
    assert weight_rho.shape == (N, 1) and bias.shape == (N,)

    tn = min(tn, _round_up(N, 128))
    tk = min(tk, _round_up(K, 128))
    Np, Kp = _round_up(N, tn), _round_up(K, tk)

    w_t = _pad2d(weight_mu.astype(compute_dtype).T, Kp, Np)            # (Kp, Np)
    sigma_row = _pad2d(_softplus(weight_rho.astype(jnp.float32)).reshape(1, N),
                       1, Np)                                           # pads -> 0
    bias_row = _pad2d(bias.astype(jnp.float32).reshape(1, N), 1, Np)

    return dict(w_t=w_t, sigma_row=sigma_row, bias_row=bias_row,
                N=N, K=K, Np=Np, Kp=Kp, tn=tn, tk=tk,
                compute_dtype=compute_dtype)


# ---------------------------------- forward ----------------------------------


def bayesian_linear_forward(x, params, *, sample=False, eps=None, rng_key=None,
                            tm=512, out_dtype=None):
    """Pallas TPU BayesianLinear.forward.

    x       : (..., in_features)
    params  : output of prepare_bayesian_linear_params
    sample=False             -> y = x @ mu.T + b
    sample=True, eps given   -> y = x @ (mu + softplus(rho) * eps).T + b
    sample=True, rng_key     -> same, with a fresh eps draw for this call
    """
    N, K = params["N"], params["K"]
    Np, Kp, tn, tk = params["Np"], params["Kp"], params["tn"], params["tk"]
    cdt = params["compute_dtype"]
    w_t, sigma_row, bias_row = params["w_t"], params["sigma_row"], params["bias_row"]

    lead_shape = x.shape[:-1]
    assert x.shape[-1] == K
    x2 = x.reshape(-1, K)
    M = x2.shape[0]
    out_dtype = out_dtype or x.dtype

    # Large row tile: the full weight (and eps) panel is re-streamed once per
    # i block, so bigger tm directly cuts HBM traffic for large batches.
    tm = min(tm, _round_up(M, 8))
    Mp = _round_up(M, tm)
    xp = _pad2d(x2.astype(cdt), Mp, Kp)

    grid = (Mp // tm, Np // tn, Kp // tk)
    # NOTE(v7x megacore): with small M the i axis collapses to 1 and core
    # sharding rides on the j axis; choose tn in prepare() so Np // tn >= 2
    # when N is large enough.
    f32_stream = np.dtype(cdt) == np.dtype(np.float32)
    precision = lax.Precision.HIGHEST if f32_stream else lax.Precision.DEFAULT

    # VMEM budget from the double-buffered tile working set; cap at 40 MiB so a
    # v7x TensorCore (64 MiB VMEM) keeps compiler scratch headroom.
    it = np.dtype(cdt).itemsize
    ot = np.dtype(out_dtype).itemsize
    n_panels = 2 if sample else 1
    tile_bytes = (2 * tm * tk * it                 # x
                  + 2 * n_panels * tk * tn * it    # weight (+ eps)
                  + 2 * 2 * 8 * tn * 4             # sigma + bias rows (sublane pad)
                  + 2 * tm * tn * ot               # output
                  + tm * tn * 4)                   # f32 accumulator
    vmem_limit = int(min(max(2 * tile_bytes, 16 * 2**20), 40 * 2**20))

    cparams = pltpu.CompilerParams(
        dimension_semantics=("parallel", "parallel", "arbitrary"),
        vmem_limit_bytes=vmem_limit,
    )

    x_spec = pl.BlockSpec((tm, tk), lambda i, j, k: (i, k))
    w_spec = pl.BlockSpec((tk, tn), lambda i, j, k: (k, j))
    e_spec = pl.BlockSpec((tk, tn), lambda i, j, k: (k, j))
    s_spec = pl.BlockSpec((1, tn), lambda i, j, k: (0, j))
    b_spec = pl.BlockSpec((1, tn), lambda i, j, k: (0, j))
    o_spec = pl.BlockSpec((tm, tn), lambda i, j, k: (i, j))

    out_shape = jax.ShapeDtypeStruct((Mp, Np), out_dtype)
    acc = pltpu.VMEM((tm, tn), jnp.float32)

    flops = 2 * Mp * Np * Kp + (2 * Np * Kp if sample else 0)
    bytes_accessed = int(Mp * Kp * it + n_panels * Kp * Np * it
                         + 2 * Np * 4 + Mp * Np * ot)
    ce = pl.CostEstimate(flops=int(flops), transcendentals=0,
                         bytes_accessed=bytes_accessed)

    if not sample:
        out = pl.pallas_call(
            functools.partial(_mu_kernel, precision=precision),
            out_shape=out_shape,
            grid=grid,
            in_specs=[x_spec, w_spec, b_spec],
            out_specs=o_spec,
            scratch_shapes=[acc],
            compiler_params=cparams,
            cost_estimate=ce,
        )(xp, w_t, bias_row)
    else:
        if eps is not None:
            assert eps.shape == (N, K)
            eps_t = _pad2d(eps.astype(cdt).T, Kp, Np)
        else:
            assert rng_key is not None, "sample=True requires eps or rng_key"
            # Fresh draw per forward call (PyTorch semantics), generated
            # directly in the transposed/padded layout -> no per-call pad or
            # transpose of a weight-sized tensor.  Padded region is harmless:
            # sigma is zero there.
            eps_t = jax.random.normal(rng_key, (Kp, Np), dtype=cdt)
        out = pl.pallas_call(
            functools.partial(_sample_kernel, precision=precision),
            out_shape=out_shape,
            grid=grid,
            in_specs=[x_spec, w_spec, s_spec, e_spec, b_spec],
            out_specs=o_spec,
            scratch_shapes=[acc],
            compiler_params=cparams,
            cost_estimate=ce,
        )(xp, w_t, sigma_row, eps_t, bias_row)

    return out[:M, :N].reshape(*lead_shape, N)


# ----------------------- deterministic parameter init ------------------------


def init_bayesian_linear_params(key, in_features, out_features, ratio=0.5):
    fan_in = in_features
    total_var = 2.0 / fan_in
    noise_var = total_var * ratio
    mu_var = total_var - noise_var
    noise_std, mu_std = math.sqrt(noise_var), math.sqrt(mu_var)
    bound = math.sqrt(3.0) * mu_std
    rho_init = float(np.log(np.exp(noise_std) - 1.0))

    k_mu, _ = jax.random.split(key)
    weight_mu = jax.random.uniform(
        k_mu, (out_features, in_features), jnp.float32, -bound, bound)
    bias = jnp.zeros((out_features,), jnp.float32)            # .uniform_(0, 0)
    weight_rho = jnp.full((out_features, 1), rho_init, jnp.float32)
    return weight_mu, weight_rho, bias


# ------------------------------------ main ------------------------------------


if __name__ == "__main__":
    key = jax.random.PRNGKey(0)
    k_param, k_x, k_eps, k_fwd = jax.random.split(key, 4)

    batch, in_features, out_features = 8, 32, 32
    weight_mu, weight_rho, bias = init_bayesian_linear_params(
        k_param, in_features, out_features, ratio=0.5)
    x = jax.random.normal(k_x, (batch, in_features), jnp.float32)

    # ---- f32 streaming: parity with the PyTorch reference ------------------
    p32 = prepare_bayesian_linear_params(weight_mu, weight_rho, bias,
                                         compute_dtype=jnp.float32)

    y = jax.block_until_ready(bayesian_linear_forward(x, p32, sample=False))
    y_ref = x @ weight_mu.T + bias
    np.testing.assert_allclose(np.asarray(y), np.asarray(y_ref),
                               rtol=1e-4, atol=1e-4)

    eps = jax.random.normal(k_eps, (out_features, in_features), jnp.float32)
    y_s = jax.block_until_ready(
        bayesian_linear_forward(x, p32, sample=True, eps=eps))
    w_ref = weight_mu + jnp.log1p(jnp.exp(weight_rho)) * eps
    y_s_ref = x @ w_ref.T + bias
    np.testing.assert_allclose(np.asarray(y_s), np.asarray(y_s_ref),
                               rtol=1e-4, atol=1e-4)

    # ---- sample=True with a fresh per-forward draw (PyTorch-style) ---------
    y_r = jax.block_until_ready(
        bayesian_linear_forward(x, p32, sample=True, rng_key=k_fwd))
    assert y_r.shape == y_ref.shape
    assert bool(jnp.all(jnp.isfinite(y_r)))
    # sigma is small at init, so the sampled output stays near the mean output.
    assert bool(jnp.max(jnp.abs(y_r - y_ref)) < 25.0)

    # ---- bf16 HBM streaming (recommended fast path; f32 accumulate) --------
    pbf = prepare_bayesian_linear_params(weight_mu, weight_rho, bias,
                                         compute_dtype=jnp.bfloat16)
    y_bf = jax.block_until_ready(bayesian_linear_forward(x, pbf, sample=False))
    ref_bf = (x.astype(jnp.bfloat16).astype(jnp.float32)
              @ weight_mu.astype(jnp.bfloat16).astype(jnp.float32).T + bias)
    np.testing.assert_allclose(np.asarray(y_bf), np.asarray(ref_bf),
                               rtol=2e-2, atol=2e-2)

    print("KERNEL_OK")
</pallas_src>

<mosaic_0001>
module attributes {stable_mosaic.version = 11 : i64} {
  func.func @_mu_kernel(%arg0: i32, %arg1: i32, %arg2: i32, %arg3: memref<8x128xf32, #tpu.memory_space<vmem>>, %arg4: memref<128x128xf32, #tpu.memory_space<vmem>>, %arg5: memref<1x128xf32, #tpu.memory_space<vmem>>, %arg6: memref<8x128xf32, #tpu.memory_space<vmem>>, %arg7: memref<8x128xf32, #tpu.memory_space<vmem>>) attributes {dimension_semantics = [#tpu.dimension_semantics<parallel>, #tpu.dimension_semantics<parallel>, #tpu.dimension_semantics<arbitrary>], iteration_bounds = array<i64: 1, 1, 1>, scalar_prefetch = 0 : i64, scratch_operands = 1 : i64, tpu.core_type = #tpu.core_type<tc>, window_params = [{transform_indices = @transform_0, window_bounds = array<i64: 8, 128>}, {transform_indices = @transform_1, window_bounds = array<i64: 128, 128>}, {transform_indices = @transform_2, window_bounds = array<i64: 1, 128>}, {transform_indices = @transform_3, window_bounds = array<i64: 8, 128>}]} {
    %c0_i32 = arith.constant 0 : i32
    %0 = arith.cmpi eq, %arg2, %c0_i32 : i32
    %1 = arith.extui %0 : i1 to i32
    %c0_i32_0 = arith.constant 0 : i32
    %2 = arith.cmpi ne, %1, %c0_i32_0 : i32
    scf.if %2 {
      %cst_10 = arith.constant 0.000000e+00 : f32
      %12 = vector.broadcast %cst_10 : f32 to vector<8x128xf32>
      %c0_11 = arith.constant 0 : index
      %c0_12 = arith.constant 0 : index
      %13 = vector.load %arg7[%c0_11, %c0_12] : memref<8x128xf32, #tpu.memory_space<vmem>>, vector<8x128xf32>
      tpu.vector_store %arg7[%c0_11, %c0_12], %12 {strides = array<i32>} : memref<8x128xf32, #tpu.memory_space<vmem>>, vector<8x128xf32>,
    } else {
    }
    %c0 = arith.constant 0 : index
    %c0_1 = arith.constant 0 : index
    %3 = vector.load %arg7[%c0, %c0_1] : memref<8x128xf32, #tpu.memory_space<vmem>>, vector<8x128xf32>
    %c0_2 = arith.constant 0 : index
    %c0_3 = arith.constant 0 : index
    %4 = vector.load %arg3[%c0_2, %c0_3] : memref<8x128xf32, #tpu.memory_space<vmem>>, vector<8x128xf32>
    %c0_4 = arith.constant 0 : index
    %c0_5 = arith.constant 0 : index
    %5 = vector.load %arg4[%c0_4, %c0_5] : memref<128x128xf32, #tpu.memory_space<vmem>>, vector<128x128xf32>
    %cst = arith.constant dense<0.000000e+00> : vector<8x128xf32>
    %6 = tpu.matmul %4, %5, %cst {dimension_numbers = #tpu.dot_dimension_numbers<[1], [0], [0], [1], [0, 0, 1, 1], [], []>, precision = #tpu.contract_precision<fp32>} : vector<8x128xf32>, vector<128x128xf32>, vector<8x128xf32> -> vector<8x128xf32>
    %7 = arith.addf %3, %6 : vector<8x128xf32>
    %c0_6 = arith.constant 0 : index
    %c0_7 = arith.constant 0 : index
    %8 = vector.load %arg7[%c0_6, %c0_7] : memref<8x128xf32, #tpu.memory_space<vmem>>, vector<8x128xf32>
    tpu.vector_store %arg7[%c0_6, %c0_7], %7 {strides = array<i32>} : memref<8x128xf32, #tpu.memory_space<vmem>>, vector<8x128xf32>,
    %c0_i32_8 = arith.constant 0 : i32
    %9 = arith.cmpi eq, %arg2, %c0_i32_8 : i32
    %10 = arith.extui %9 : i1 to i32
    %c0_i32_9 = arith.constant 0 : i32
    %11 = arith.cmpi ne, %10, %c0_i32_9 : i32
    scf.if %11 {
      %c0_10 = arith.constant 0 : index
      %c0_11 = arith.constant 0 : index
      %12 = vector.load %arg7[%c0_10, %c0_11] : memref<8x128xf32, #tpu.memory_space<vmem>>, vector<8x128xf32>
      %c0_12 = arith.constant 0 : index
      %c0_13 = arith.constant 0 : index
      %13 = vector.load %arg5[%c0_12, %c0_13] : memref<1x128xf32, #tpu.memory_space<vmem>>, vector<1x128xf32>
      %14 = vector.broadcast %13 : vector<1x128xf32> to vector<8x128xf32>
      %15 = arith.addf %12, %14 : vector<8x128xf32>
      %c0_14 = arith.constant 0 : index
      %c0_15 = arith.constant 0 : index
      %16 = vector.load %arg6[%c0_14, %c0_15] : memref<8x128xf32, #tpu.memory_space<vmem>>, vector<8x128xf32>
      tpu.vector_store %arg6[%c0_14, %c0_15], %15 {strides = array<i32>} : memref<8x128xf32, #tpu.memory_space<vmem>>, vector<8x128xf32>,
    } else {
    }
    return
  }
  func.func @transform_0(%arg0: i32, %arg1: i32, %arg2: i32) -> (i32, i32) {
    %c0_i32 = arith.constant 0 : i32
    return %arg0, %arg2 : i32, i32
  }
  func.func @transform_1(%arg0: i32, %arg1: i32, %arg2: i32) -> (i32, i32) {
    %c0_i32 = arith.constant 0 : i32
    return %arg2, %arg1 : i32, i32
  }
  func.func @transform_2(%arg0: i32, %arg1: i32, %arg2: i32) -> (i32, i32) {
    %c0_i32 = arith.constant 0 : i32
    %c0_i32_0 = arith.constant 0 : i32
    return %c0_i32, %arg1 : i32, i32
  }
  func.func @transform_3(%arg0: i32, %arg1: i32, %arg2: i32) -> (i32, i32) {
    %c0_i32 = arith.constant 0 : i32
    return %arg0, %arg1 : i32, i32
  }
}

</mosaic_0001>

<bundles_post_ra>
// kernel: tpu_custom_call.1
= control target key start
LH: loop header
LB: loop body
LE: loop exit
PB: predicated region body
PF: predicated region fallthrough
CT: control target
= control target key end

     0   :  { %8 = vsyncpa [#allocation4], 0  ;;  %s1606_s0 = inlined_call_operand.hbm [shape: f32[8,128], index: 0, kind: input, shape index: {}]   ;;  %s1607_s1 = inlined_call_operand.hbm [shape: f32[128,128], index: 1, kind: input, shape index: {}]   ;;  %s1608_s2 = inlined_call_operand.vmem [shape: f32[1,128], index: 2, kind: input, shape index: {}]   ;;  %s1609_s3 = inlined_call_operand.hbm [shape: f32[8,128], index: 3, kind: output, shape index: {}]  }
   0x1   :  { %9 = vsyncpa [#allocation7], 0 }
   0x2   :  { %10 = vsyncpa [#allocation5], 0  ;;  %s1273_s12 = smov [#allocation3]   ;;  %s1274_s14 = smov [#allocation6]  }
   0x3   :  { %s17_s13 = sshll.u32 %s1273_s12, 4  ;;  %s26_s15 = sshll.u32 %s1274_s14, 4  ;;  %s18_s13 = int_to_ptr.vmem [resolvable:$true] %s17_s13  ;;  %s1301_s15 = int_to_ptr.vmem [resolvable:$true] %s26_s15 }
   0x4   :  { %s1201_s18 = scalar_lea.hbm %s1606_s0, 128 }
   0x5   :  { %p1202_p0 = scmp.ne.s32.totalorder %s1606_s0, %s1201_s18  ;;  %p1205_p1 = scmp.lt.u32.totalorder %s1201_s18, %s1606_s0 }
   0x7   :  { %p1207_p2 = pnand %p1205_p1, %p1202_p0 }
   0x9   :  { %1210 = shalt.err (!%p1207_p2)
}
   0xa   :  { %s1211_s23 = scalar_lea.vmem %s18_s13, 128  ;;  %p1216_p4 = scmp.lt.s32.totalorder %s18_s13, %s18_s13 }
   0xb   :  { %p1212_p3 = scmp.ne.s32.totalorder %s18_s13, %s1211_s23  ;;  %p1217_p5 = scmp.lt.s32.totalorder %s1211_s23, %s1211_s23 }
   0xd   :  { %p1218_p6 = por %p1217_p5, %p1216_p4 }
   0xf   :  { %p1219_p7 = pnand %p1218_p6, %p1212_p3 }
  0x11   :  { %1222 = shalt.err (!%p1219_p7)
}
  0x12   :  { %20 = dma.hbm_to_vmem [thread:$0]  %s1606_s0, 128, %s18_s13, [#allocation4]  }
  0x13   :  { %s1223_s28 = scalar_lea.hbm %s1607_s1, 2048 }
  0x14   :  { %p1224_p8 = scmp.ne.s32.totalorder %s1607_s1, %s1223_s28  ;;  %p1227_p9 = scmp.lt.u32.totalorder %s1223_s28, %s1607_s1 }
  0x16   :  { %p1229_p10 = pnand %p1227_p9, %p1224_p8 }
  0x18   :  { %1232 = shalt.err (!%p1229_p10)
}
  0x19   :  { %s1233_s6 = scalar_lea.vmem %s1301_s15, 2048  ;;  %p1238_p12 = scmp.lt.s32.totalorder %s1301_s15, %s1301_s15 }
  0x1a   :  { %p1234_p11 = scmp.ne.s32.totalorder %s1301_s15, %s1233_s6  ;;  %p1239_p13 = scmp.lt.s32.totalorder %s1233_s6, %s1233_s6 }
  0x1c   :  { %p1240_p0 = por %p1239_p13, %p1238_p12 }
  0x1e   :  { %p1241_p1 = pnand %p1240_p0, %p1234_p11 }
  0x20   :  { %1244 = shalt.err (!%p1241_p1)
}
  0x21   :  { %s1275_s0 = smov 128   ;;  %s1276_s7 = smov 8  }
  0x22   :  { %32 = dma.hbm_to_vmem [thread:$0]  %s1607_s1, 2048, %s1301_s15, [#allocation7], %s1275_s0, %s1275_s0, %s1276_s7  }
  0x23   :  { %1267 = dma.done.wait [#allocation4], 128  }
  0x24   :  { %1268 = vsyncadd [#allocation4], 4294967168 }
  0x25   :  { %1269 = dma.done.wait [#allocation7], 2048  }
  0x26   :  { %1270 = vsyncadd [#allocation7], 4294965248  ;;  %v1277_v0 = vmov 0.0|0.0   ;;  %vm1278_vm0 = vmmov 0   ;;  %v1279_v1 = vmov 0.0   ;;  %v48_v2 = vld [vmem:[#allocation6] sm:$0xff] }
  0x27   :  { %1049 = vmatprep.subr.bf16.mxu0 %v1277_v0  ;;  %1073 = vmatprep.subr.bf16.mxu1 %v1277_v0  ;;  %v49_v3 = vld [vmem:[#allocation6 + $0x8] sm:$0xff]  ;;  %v50_v4 = vld [vmem:[#allocation6 + $0x10] sm:$0xff]  ;;  %v65_v5 = vand.u32 4294901760, %v48_v2  ;;  %v51_v7 = vld [vmem:[#allocation6 + $0x18] sm:$0xff]  ;;  %s1280_s11 = smov [#allocation8]  }
  0x28   :  { %871 = vmatprep.mubr.msk.f32.mxu0 %vm1278_vm0, %v1279_v1  ;;  %906 = vmatprep.mubr.msk.f32.mxu1 %vm1278_vm0, %v1279_v1  ;;  %v68_v6 = vand.u32 4294901760, %v49_v3  ;;  %v71_v8 = vand.u32 4294901760, %v50_v4  ;;  %v52_v9 = vld [vmem:[#allocation6 + $0x20] sm:$0xff]  ;;  %v53_v10 = vld [vmem:[#allocation6 + $0x28] sm:$0xff]  ;;  %v74_v11 = vand.u32 4294901760, %v51_v7  ;;  %v54_v14 = vld [vmem:[#allocation6 + $0x30] sm:$0xff] }
  0x29   :  { %v77_v12 = vand.u32 4294901760, %v52_v9  ;;  %v80_v13 = vand.u32 4294901760, %v53_v10  ;;  %v1340_v16 = vsub.f32 %v48_v2, %v65_v5  ;;  %v55_v19 = vld [vmem:[#allocation6 + $0x38] sm:$0xff]  ;;  %v56_v20 = vld [vmem:[#allocation6 + $0x40] sm:$0xff]  ;;  %v83_v26 = vand.u32 4294901760, %v54_v14  ;;  %v57_v27 = vld [vmem:[#allocation6 + $0x48] sm:$0xff] }
  0x2a   :  { %v1338_v15 = vpack.c.bf16 %v68_v6, %v65_v5  ;;  %v1342_v17 = vsub.f32 %v49_v3, %v68_v6  ;;  %v1344_v18 = vsub.f32 %v50_v4, %v71_v8  ;;  %v1346_v21 = vpack.c.bf16 %v74_v11, %v71_v8  ;;  %v58_v40 = vld [vmem:[#allocation6 + $0x50] sm:$0xff]  ;;  %v59_v41 = vld [vmem:[#allocation6 + $0x58] sm:$0xff]  ;;  %v60_v50 = vld [vmem:[#allocation6 + $0x60] sm:$0xff]  ;;  %s726_s12 = sshll.u32 %s1280_s11, 4  ;;  %s727_s12 = int_to_ptr.vmem [resolvable:$true] %s726_s12 }
  0x2b   :  { %v1348_v22 = vsub.f32 %v51_v7, %v74_v11  ;;  %v1351_v23 = vsub.f32 %v52_v9, %v77_v12  ;;  %v158_v24 = vand.u32 4294901760, %v1340_v16  ;;  %v86_v28 = vand.u32 4294901760, %v55_v19  ;;  %v61_v59 = vld [vmem:[#allocation6 + $0x68] sm:$0xff]  ;;  %v62_v2 = vld [vmem:[#allocation6 + $0x70] sm:$0xff]  ;;  %v63_v7 = vld [vmem:[#allocation6 + $0x78] sm:$0xff]  ;;  %s1245_s13 = scalar_lea.vmem %s727_s12, 128  ;;  %p1250_p3 = scmp.lt.s32.totalorder %s727_s12, %s727_s12 }
  0x2c   :  { %1051 = vmatpush3.bf16.msra.mxu0 %v1338_v15  ;;  %v165_v25 = vand.u32 4294901760, %v1342_v17  ;;  %v172_v29 = vand.u32 4294901760, %v1344_v18  ;;  %v89_v31 = vand.u32 4294901760, %v56_v20  ;;  %v1358_v32 = vsub.f32 %v53_v10, %v80_v13  ;;  %p1246_p2 = scmp.ne.s32.totalorder %s727_s12, %s1245_s13  ;;  %p1251_p4 = scmp.lt.s32.totalorder %s1245_s13, %s1245_s13 }
  0x2d   :  { %1052 = vmatprep.subr.bf16.mxu0 %v1277_v0  ;;  %v179_v30 = vand.u32 4294901760, %v1348_v22  ;;  %v159_v33 = vsub.f32 %v1340_v16, %v158_v24  ;;  %v1366_v35 = vsub.f32 %v54_v14, %v83_v26  ;;  %v1368_v36 = vsub.f32 %v55_v19, %v86_v28 }
  0x2e   :  { %v166_v34 = vsub.f32 %v1342_v17, %v165_v25  ;;  %v173_v37 = vsub.f32 %v1344_v18, %v172_v29  ;;  %v92_v39 = vand.u32 4294901760, %v57_v27  ;;  %v1377_v42 = vpack.c.bf16 %v80_v13, %v77_v12  ;;  %p1252_p5 = por %p1251_p4, %p1250_p3 }
  0x2f   :  { %v180_v38 = vsub.f32 %v1348_v22, %v179_v30  ;;  %v160_v43 = vand.u32 4294901760, %v159_v33  ;;  %v1379_v45 = vpack.c.bf16 %v86_v28, %v83_v26  ;;  %v1382_v48 = vsub.f32 %v56_v20, %v89_v31 }
  0x30   :  { %1054 = vmatpush3.bf16.msra.mxu0 %v1346_v21  ;;  %v167_v44 = vand.u32 4294901760, %v166_v34  ;;  %v174_v46 = vand.u32 4294901760, %v173_v37  ;;  %v186_v49 = vand.u32 4294901760, %v1351_v23  ;;  %v193_v52 = vand.u32 4294901760, %v1358_v32  ;;  %p1253_p6 = pnand %p1252_p5, %p1246_p2 }
  0x31   :  { %1055 = vmatprep.subr.bf16.mxu0 %v1277_v0  ;;  %v181_v47 = vand.u32 4294901760, %v180_v38  ;;  %v95_v53 = vand.u32 4294901760, %v58_v40  ;;  %v98_v54 = vand.u32 4294901760, %v59_v41  ;;  %v1386_v55 = vsub.f32 %v57_v27, %v92_v39 }
  0x32   :  { %v1074_v51 = vpack.c.bf16 %v167_v44, %v160_v43  ;;  %v187_v56 = vsub.f32 %v1351_v23, %v186_v49  ;;  %v200_v57 = vand.u32 4294901760, %v1366_v35  ;;  %v207_v58 = vand.u32 4294901760, %v1368_v36 }
  0x33   :  { %v1077_v60 = vpack.c.bf16 %v181_v47, %v174_v46  ;;  %v1394_v61 = vpack.c.bf16 %v92_v39, %v89_v31  ;;  %v194_v62 = vsub.f32 %v1358_v32, %v193_v52  ;;  %v101_v63 = vand.u32 4294901760, %v60_v50  ;;  %v47_v31 = vld [vmem:[#allocation3] sm:$0xff] }
  0x34   :  { %1057 = vmatpush3.bf16.msra.mxu0 %v1377_v42  ;;  %1075 = vmatpush3.bf16.msra.mxu1 %v1074_v51  ;;  %v188_v3 = vand.u32 4294901760, %v187_v56  ;;  %v1401_v4 = vsub.f32 %v58_v40, %v95_v53  ;;  %v201_v5 = vsub.f32 %v1366_v35, %v200_v57  ;;  %v208_v6 = vsub.f32 %v1368_v36, %v207_v58 }
  0x35   :  { %1058 = vmatprep.subr.bf16.mxu0 %v1277_v0  ;;  %1076 = vmatprep.subr.bf16.mxu1 %v1277_v0  ;;  %v195_v8 = vand.u32 4294901760, %v194_v62  ;;  %v1409_v9 = vsub.f32 %v59_v41, %v98_v54  ;;  %v104_v10 = vand.u32 4294901760, %v61_v59  ;;  %v214_v11 = vand.u32 4294901760, %v1382_v48 }
  0x36   :  { %v202_v12 = vand.u32 4294901760, %v201_v5  ;;  %v209_v13 = vand.u32 4294901760, %v208_v6  ;;  %v221_v14 = vand.u32 4294901760, %v1386_v55  ;;  %v107_v19 = vand.u32 4294901760, %v62_v2 }
  0x37   :  { %v1080_v20 = vpack.c.bf16 %v195_v8, %v188_v3  ;;  %v1414_v26 = vsub.f32 %v60_v50, %v101_v63  ;;  %v1416_v27 = vsub.f32 %v61_v59, %v104_v10  ;;  %v110_v28 = vand.u32 4294901760, %v63_v7 }
  0x38   :  { %1060 = vmatpush3.bf16.msra.mxu0 %v1379_v45  ;;  %1078 = vmatpush3.bf16.msra.mxu1 %v1077_v60  ;;  %v215_v33 = vsub.f32 %v1382_v48, %v214_v11  ;;  %v222_v34 = vsub.f32 %v1386_v55, %v221_v14  ;;  %v228_v37 = vand.u32 4294901760, %v1401_v4  ;;  %v1427_v38 = vpack.c.bf16 %v98_v54, %v95_v53 }
  0x39   :  { %1061 = vmatprep.subr.bf16.mxu0 %v1277_v0  ;;  %1079 = vmatprep.subr.bf16.mxu1 %v1277_v0  ;;  %v1083_v39 = vpack.c.bf16 %v209_v13, %v202_v12  ;;  %v1429_v40 = vsub.f32 %v62_v2, %v107_v19  ;;  %v235_v41 = vand.u32 4294901760, %v1409_v9  ;;  %v1435_v47 = vand.u32 4294901760, %v47_v31 }
  0x3a   :  { %v216_v43 = vand.u32 4294901760, %v215_v33  ;;  %v223_v44 = vand.u32 4294901760, %v222_v34  ;;  %v229_v46 = vsub.f32 %v1401_v4, %v228_v37  ;;  %v1438_v50 = vsub.f32 %v63_v7, %v110_v28 }
  0x3b   :  { %v236_v51 = vsub.f32 %v1409_v9, %v235_v41  ;;  %v242_v53 = vand.u32 4294901760, %v1414_v26  ;;  %v249_v54 = vand.u32 4294901760, %v1416_v27  ;;  %v1448_v56 = vsub.f32 %v47_v31, %v1435_v47 }
  0x3c   :  { %1063 = vmatpush3.bf16.msra.mxu0 %v1394_v61  ;;  %1081 = vmatpush3.bf16.msra.mxu1 %v1080_v20  ;;  %v1450_v59 = vpack.c.bf16 %v104_v10, %v101_v63  ;;  %v1086_v60 = vpack.c.bf16 %v223_v44, %v216_v43  ;;  %v230_v62 = vand.u32 4294901760, %v229_v46  ;;  %v256_v3 = vand.u32 4294901760, %v1429_v40 }
  0x3d   :  { %1064 = vmatprep.subr.bf16.mxu0 %v1277_v0  ;;  %1082 = vmatprep.subr.bf16.mxu1 %v1277_v0  ;;  %v147_v2 = vand.u32 4294901760, %v1448_v56  ;;  %v237_v5 = vand.u32 4294901760, %v236_v51  ;;  %v243_v6 = vsub.f32 %v1414_v26, %v242_v53  ;;  %v250_v7 = vsub.f32 %v1416_v27, %v249_v54 }
  0x3e   :  { %v263_v63 = vand.u32 4294901760, %v1438_v50  ;;  %v1464_v8 = vpack.c.bf16 %v110_v28, %v107_v19  ;;  %v257_v12 = vsub.f32 %v1429_v40, %v256_v3  ;;  %v1098_v34 = vpack.c.bf16 %v1342_v17, %v1340_v16 }
  0x3f   :  { %v148_v10 = vsub.f32 %v1448_v56, %v147_v2  ;;  %v1089_v13 = vpack.c.bf16 %v237_v5, %v230_v62  ;;  %v244_v20 = vand.u32 4294901760, %v243_v6  ;;  %v251_v31 = vand.u32 4294901760, %v250_v7 }
  0x40   :  { %1066 = vmatpush3.bf16.msra.mxu0 %v1427_v38  ;;  %1084 = vmatpush3.bf16.msra.mxu1 %v1083_v39  ;;  %v264_v33 = vsub.f32 %v1438_v50, %v263_v63  ;;  %v258_v39 = vand.u32 4294901760, %v257_v12  ;;  %v1101_v46 = vpack.c.bf16 %v1348_v22, %v1344_v18  ;;  %v1104_v51 = vpack.c.bf16 %v1358_v32, %v1351_v23 }
  0x41   :  { %1067 = vmatprep.subr.bf16.mxu0 %v1277_v0  ;;  %1085 = vmatprep.subr.bf16.mxu1 %v1277_v0  ;;  %v149_v19 = vand.u32 4294901760, %v148_v10  ;;  %v1092_v28 = vpack.c.bf16 %v251_v31, %v244_v20  ;;  %v1110_v62 = vpack.c.bf16 %v1386_v55, %v1382_v48  ;;  %v1113_v5 = vpack.c.bf16 %v1409_v9, %v1401_v4 }
  0x42   :  { %v265_v43 = vand.u32 4294901760, %v264_v33  ;;  %v1116_v6 = vpack.c.bf16 %v1416_v27, %v1414_v26  ;;  %v1119_v7 = vpack.c.bf16 %v1438_v50, %v1429_v40  ;;  %v1146_v10 = vpack.c.bf16 %v165_v25, %v158_v24 }
  0x43   :  { %v1149_v12 = vpack.c.bf16 %v179_v30, %v172_v29  ;;  %v1152_v16 = vpack.c.bf16 %v193_v52, %v186_v49  ;;  %v1155_v17 = vpack.c.bf16 %v207_v58, %v200_v57  ;;  %v1164_v18 = vpack.c.bf16 %v249_v54, %v242_v53 }
  0x44   :  { %1069 = vmatpush3.bf16.msra.mxu0 %v1450_v59  ;;  %1087 = vmatpush3.bf16.msra.mxu1 %v1086_v60  ;;  %v1095_v44 = vpack.c.bf16 %v265_v43, %v258_v39  ;;  %v1107_v60 = vpack.c.bf16 %v1368_v36, %v1366_v35 }
  0x45   :  { %1070 = vmatprep.subr.bf16.mxu0 %v1277_v0  ;;  %1088 = vmatprep.subr.bf16.mxu1 %v1277_v0 }
  0x48   :  { %1072 = vmatpush3.bf16.msra.mxu0 %v1464_v8  ;;  %1090 = vmatpush3.bf16.msra.mxu1 %v1089_v13 }
  0x49   :  { %1091 = vmatprep.subr.bf16.mxu1 %v1277_v0  ;;  %1097 = vmatprep.subr.bf16.mxu0 %v1277_v0 }
  0x4b   :  { %872 = vmatmul.mubr.f32.vlgmr.msra.gmra.mrb[0].mxu0 %v149_v19 }
  0x4c   :  { %1093 = vmatpush3.bf16.msra.mxu1 %v1092_v28  ;;  %1099 = vmatpush3.bf16.msra.mxu0 %v1098_v34 }
  0x4d   :  { %1094 = vmatprep.subr.bf16.mxu1 %v1277_v0  ;;  %1100 = vmatprep.subr.bf16.mxu0 %v1277_v0 }
  0x4e   :  { %941 = vmatprep.mubr.msk.f32.mxu0 %vm1278_vm0, %v1279_v1 }
  0x50   :  { %1096 = vmatpush3.bf16.msra.mxu1 %v1095_v44  ;;  %1102 = vmatpush3.bf16.msra.mxu0 %v1101_v46 }
  0x51   :  { %1103 = vmatprep.subr.bf16.mxu0 %v1277_v0  ;;  %1121 = vmatprep.subr.bf16.mxu1 %v1277_v0 }
  0x53   :  { %907 = vmatmul.mubr.f32.vlgmr.msra.gmra.mrb[0].mxu1 %v1435_v47 }
  0x54   :  { %1105 = vmatpush3.bf16.msra.mxu0 %v1104_v51  ;;  %1123 = vmatpush3.bf16.msra.mxu1 %v1338_v15 }
  0x55   :  { %1106 = vmatprep.subr.bf16.mxu0 %v1277_v0  ;;  %1124 = vmatprep.subr.bf16.mxu1 %v1277_v0 }
  0x56   :  { %976 = vmatprep.mubr.msk.f32.mxu1 %vm1278_vm0, %v1279_v1 }
  0x58   :  { %1108 = vmatpush3.bf16.msra.mxu0 %v1107_v60  ;;  %1126 = vmatpush3.bf16.msra.mxu1 %v1346_v21 }
  0x59   :  { %1109 = vmatprep.subr.bf16.mxu0 %v1277_v0  ;;  %1127 = vmatprep.subr.bf16.mxu1 %v1277_v0 }
  0x5c   :  { %1111 = vmatpush3.bf16.msra.mxu0 %v1110_v62  ;;  %1129 = vmatpush3.bf16.msra.mxu1 %v1377_v42 }
  0x5d   :  { %1112 = vmatprep.subr.bf16.mxu0 %v1277_v0  ;;  %1130 = vmatprep.subr.bf16.mxu1 %v1277_v0 }
  0x60   :  { %1114 = vmatpush3.bf16.msra.mxu0 %v1113_v5  ;;  %1132 = vmatpush3.bf16.msra.mxu1 %v1379_v45 }
  0x61   :  { %1115 = vmatprep.subr.bf16.mxu0 %v1277_v0  ;;  %1133 = vmatprep.subr.bf16.mxu1 %v1277_v0 }
  0x64   :  { %1117 = vmatpush3.bf16.msra.mxu0 %v1116_v6  ;;  %1135 = vmatpush3.bf16.msra.mxu1 %v1394_v61 }
  0x65   :  { %1118 = vmatprep.subr.bf16.mxu0 %v1277_v0  ;;  %1136 = vmatprep.subr.bf16.mxu1 %v1277_v0 }
  0x68   :  { %1120 = vmatpush3.bf16.msra.mxu0 %v1119_v7  ;;  %1138 = vmatpush3.bf16.msra.mxu1 %v1427_v38 }
  0x69   :  { %1139 = vmatprep.subr.bf16.mxu1 %v1277_v0  ;;  %1145 = vmatprep.subr.bf16.mxu0 %v1277_v0 }
  0x6b   :  { %942 = vmatmul.mubr.f32.vlgmr.msra.gmra.mrb[2].mxu0 %v1448_v56 }
  0x6c   :  { %1141 = vmatpush3.bf16.msra.mxu1 %v1450_v59  ;;  %1147 = vmatpush3.bf16.msra.mxu0 %v1146_v10 }
  0x6d   :  { %1142 = vmatprep.subr.bf16.mxu1 %v1277_v0  ;;  %1148 = vmatprep.subr.bf16.mxu0 %v1277_v0 }
  0x6e   :  { %1011 = vmatprep.mubr.msk.f32.mxu0 %vm1278_vm0, %v1279_v1 }
  0x70   :  { %1144 = vmatpush3.bf16.msra.mxu1 %v1464_v8  ;;  %1150 = vmatpush3.bf16.msra.mxu0 %v1149_v12 }
  0x71   :  { %1151 = vmatprep.subr.bf16.mxu0 %v1277_v0  ;;  %1169 = vmatprep.subr.bf16.mxu1 %v1277_v0 }
  0x73   :  { %977 = vmatmul.mubr.f32.vlgmr.msra.gmra.mrb[2].mxu1 %v147_v2 }
  0x74   :  { %1153 = vmatpush3.bf16.msra.mxu0 %v1152_v16  ;;  %1171 = vmatpush3.bf16.msra.mxu1 %v1338_v15  ;;  %v1158_v15 = vpack.c.bf16 %v221_v14, %v214_v11 }
  0x75   :  { %1154 = vmatprep.subr.bf16.mxu0 %v1277_v0  ;;  %1172 = vmatprep.subr.bf16.mxu1 %v1277_v0 }
  0x76   :  { %1046 = vmatprep.mubr.msk.f32.mxu1 %vm1278_vm0, %v1279_v1  ;;  %v1161_v1 = vpack.c.bf16 %v235_v41, %v228_v37 }
  0x78   :  { %1156 = vmatpush3.bf16.msra.mxu0 %v1155_v17  ;;  %1174 = vmatpush3.bf16.msra.mxu1 %v1346_v21  ;;  %v1167_v21 = vpack.c.bf16 %v263_v63, %v256_v3 }
  0x79   :  { %1157 = vmatprep.subr.bf16.mxu0 %v1277_v0  ;;  %1175 = vmatprep.subr.bf16.mxu1 %v1277_v0 }
  0x7c   :  { %1159 = vmatpush3.bf16.msra.mxu0 %v1158_v15  ;;  %1177 = vmatpush3.bf16.msra.mxu1 %v1377_v42 }
  0x7d   :  { %1160 = vmatprep.subr.bf16.mxu0 %v1277_v0  ;;  %1178 = vmatprep.subr.bf16.mxu1 %v1277_v0 }
  0x80   :  { %1162 = vmatpush3.bf16.msra.mxu0 %v1161_v1  ;;  %1180 = vmatpush3.bf16.msra.mxu1 %v1379_v45 }
  0x81   :  { %1163 = vmatprep.subr.bf16.mxu0 %v1277_v0  ;;  %1181 = vmatprep.subr.bf16.mxu1 %v1277_v0 }
  0x84   :  { %1165 = vmatpush3.bf16.msra.mxu0 %v1164_v18  ;;  %1183 = vmatpush3.bf16.msra.mxu1 %v1394_v61 }
  0x85   :  { %1166 = vmatprep.subr.bf16.mxu0 %v1277_v0  ;;  %1184 = vmatprep.subr.bf16.mxu1 %v1277_v0 }
  0x88   :  { %1168 = vmatpush3.bf16.msra.mxu0 %v1167_v21  ;;  %1186 = vmatpush3.bf16.msra.mxu1 %v1427_v38 }
  0x89   :  { %1187 = vmatprep.subr.bf16.mxu1 %v1277_v0 }
  0x8b   :  { %1012 = vmatmul.mubr.f32.vlgmr.msra.gmra.mrb[4].mxu0 %v1435_v47 }
  0x8c   :  { %1189 = vmatpush3.bf16.msra.mxu1 %v1450_v59 }
  0x8d   :  { %1190 = vmatprep.subr.bf16.mxu1 %v1277_v0  ;;  %v736_v0 = vld [vmem:[%s1608_s2] ss:$0 sm:$0xff] }
  0x90   :  { %1192 = vmatpush3.bf16.msra.mxu1 %v1464_v8 }
  0x93   :  { %1047 = vmatmul.mubr.f32.vlgmr.msra.gmra.mrb[4].mxu1 %v1435_v47 }
 0x11e   :  { %v151_v22 = vpop.f32.mrb[0].mxu0 }
 0x11f   :  { %v873_v23 = vpop.f32.mrb[1].mxu0 }
 0x126   :  { %v302_v24 = vpop.f32.mrb[0].mxu1 }
 0x127   :  { %v303_v25 = vadd.f32 %v302_v24, %v151_v22  ;;  %v908_v29 = vpop.f32.mrb[1].mxu1 }
 0x13e   :  { %v406_v30 = vpop.f32.mrb[2].mxu0 }
 0x13f   :  { %v407_v32 = vadd.f32 %v406_v30, %v303_v25  ;;  %v943_v35 = vpop.f32.mrb[3].mxu0 }
 0x146   :  { %v495_v36 = vpop.f32.mrb[2].mxu1 }
 0x147   :  { %v496_v42 = vadd.f32 %v495_v36, %v407_v32  ;;  %v978_v45 = vpop.f32.mrb[3].mxu1 }
 0x15e   :  { %v614_v48 = vpop.f32.mrb[4].mxu0 }
 0x15f   :  { %v615_v49 = vadd.f32 %v614_v48, %v496_v42  ;;  %v1013_v52 = vpop.f32.mrb[5].mxu0 }
 0x166   :  { %v701_v55 = vpop.f32.mrb[4].mxu1 }
 0x167   :  { %v702_v57 = vadd.f32 %v701_v55, %v615_v49  ;;  %v1048_v58 = vpop.f32.mrb[5].mxu1 }
 0x169   :  { %v718_v61 = vadd.f32 %v736_v0, %v702_v57 }
 0x16b   :  { %719 = vst [vmem:[#allocation8] sm:$0xff] %v718_v61 }
 0x16c   :  { %1256 = shalt.err (!%p1253_p6)
}
 0x16d   :  { %s1257_s16 = scalar_lea.hbm %s1609_s3, 128 }
 0x16e   :  { %p1258_p7 = scmp.ne.s32.totalorder %s1609_s3, %s1257_s16  ;;  %p1261_p8 = scmp.lt.u32.totalorder %s1257_s16, %s1609_s3 }
 0x170   :  { %p1263_p9 = pnand %p1261_p8, %p1258_p7 }
 0x172   :  { %1266 = shalt.err (!%p1263_p9)
}
 0x173   :  { %729 = dma.vmem_to_hbm [thread:$0]  %s727_s12, 128, %s1609_s3, [#allocation5]  }
 0x174   :  { %1271 = dma.done.wait [#allocation5], 128  }
 0x175   :  { %1272 = vsyncadd [#allocation5], 4294967168 }
 0x176   :  { %733 = vsyncpa [#allocation4], 1 }
 0x177   :  { %734 = vsyncpa [#allocation7], 1 }
 0x178   :  { %735 = vsyncpa [#allocation5], 1 }

</bundles_post_ra>
